<compile_context>
chip_gen: v7x
topology: tpu7x:2x2x1
jax: 0.10.0
libtpu: 0.0.40
codegen_flags: <defaults>
</compile_context>

<pallas_src>
import functools

import jax
import jax.numpy as jnp
from jax.experimental import pallas as pl
from jax.experimental.pallas import tpu as pltpu


# ---------------------------------------------------------------------------
# Kernels
# ---------------------------------------------------------------------------

def _linear_relu_kernel(x_ref, w_ref, b_ref, o_ref):
    # x_ref: (tm, C)  w_ref: (C, tn)  b_ref: (1, tn) f32  o_ref: (tm, tn)
    acc = jnp.dot(x_ref[...], w_ref[...], preferred_element_type=jnp.float32)
    z = jnp.maximum(acc + b_ref[...], 0.0)
    o_ref[...] = z.astype(o_ref.dtype)


def _linear_relu_split_kernel(x_ref, w_ref, b_ref, o1_ref, o2_ref):
    # x_ref: (tm, C)  w_ref: (C, 2C)  b_ref: (1, 2C) f32  o1/o2: (tm, C)
    acc = jnp.dot(x_ref[...], w_ref[...], preferred_element_type=jnp.float32)
    z = jnp.maximum(acc + b_ref[...], 0.0)
    c = o1_ref.shape[-1]
    # TODO(synk): for production shapes, pad C to a multiple of 128 outside the
    # kernel so these lane slices stay vreg-aligned and the stores are unmasked.
    o1_ref[...] = z[:, :c].astype(o1_ref.dtype)
    o2_ref[...] = z[:, c:].astype(o2_ref.dtype)


# ---------------------------------------------------------------------------
# Tiling / VMEM planning
# ---------------------------------------------------------------------------

def _vmem_capacity_bytes():
    try:
        return int(pltpu.get_tpu_info().vmem_capacity_bytes)
    except Exception:  # conservative fallback (works on every generation)
        return 64 << 20


def _round_up(x, m):
    return -(-x // m) * m


def _row_tile(M, row_mult, tm_cap):
    """Balanced row tile: >= 2 near-equal blocks when M permits (v7x megacore)."""
    tm_cap = max(tm_cap, row_mult)
    n_steps = max(-(-M // tm_cap), 1)
    if n_steps == 1 and M > row_mult:
        n_steps = 2                      # keep both v7x TensorCores busy
    tm = -(-M // n_steps)
    if tm >= row_mult:
        tm = _round_up(tm, row_mult)     # sublane multiple (16 for bf16 packing)
    else:
        tm = M                           # tiny M: full-dim block is always legal
    return tm


def _plan_resident(M, C, Cout, cdt_size, out_size, vmem_target, vmem_cap):
    """Row-tiled plan with the whole weight resident (single-buffered) in VMEM."""

    def budget(tm):
        x_b = 2 * tm * C * cdt_size          # activations, double-buffered
        w_b = C * Cout * cdt_size            # weight, Buffered(1)
        b_b = Cout * 4                       # f32 bias, Buffered(1)
        o_b = 2 * tm * Cout * out_size       # outputs, double-buffered
        acc_b = 2 * tm * Cout * 4            # f32 matmul result + relu temp
        return x_b + w_b + b_b + o_b + acc_b

    row_mult = 16 if cdt_size < 4 else 8
    tm_cap = 2048
    while tm_cap > row_mult and budget(tm_cap) > vmem_target:
        tm_cap //= 2
    tm = _row_tile(M, row_mult, tm_cap)
    vmem_limit = int(min(max(budget(tm) * 1.25 + (1 << 20), 32 << 20), vmem_cap))
    return tm, vmem_limit


def _plan_cout_tiled(M, C, Cout, cdt_size, out_size, vmem_target, vmem_cap):
    """2-D (rows x Cout) plan: weight streamed in (C, tn) tiles (large embed_dim)."""
    if Cout < 128:
        tn = Cout                            # full-dim lane block (always legal)
    else:
        tn = 2048
        while tn > 128 and (tn > Cout or 2 * C * tn * cdt_size > max(vmem_target // 3, 1)):
            tn //= 2

    def budget(tm):
        x_b = 2 * tm * C * cdt_size
        w_b = 2 * C * tn * cdt_size
        b_b = 2 * tn * 4
        o_b = 2 * tm * tn * out_size
        acc_b = 2 * tm * tn * 4
        return x_b + w_b + b_b + o_b + acc_b

    row_mult = 16 if cdt_size < 4 else 8
    tm_cap = 2048
    while tm_cap > row_mult and budget(tm_cap) > vmem_target:
        tm_cap //= 2
    tm = _row_tile(M, row_mult, tm_cap)
    vmem_limit = int(min(max(budget(tm) * 1.25 + (1 << 20), 32 << 20), vmem_cap))
    return tm, tn, vmem_limit


# ---------------------------------------------------------------------------
# Forward pass
# ---------------------------------------------------------------------------

@functools.partial(jax.jit, static_argnames=("expand", "compute_dtype", "force_cout_tiling"))
def token_split_forward(x, w, b, *, expand, compute_dtype=jnp.bfloat16,
                        force_cout_tiling=False):
    """TokenSplit forward.

    x: (N, B, C); w: (C, C*expand) (transposed vs torch's (Cout, C)); b: (C*expand,).
    Returns (N, B, C*expand) for expand==1, else a 2-tuple of (N, B, C).
    """
    assert expand in (1, 2)
    N, B, C = x.shape
    Cout = C * expand
    M = N * B

    out_dtype = x.dtype
    cdt = jnp.dtype(compute_dtype)
    xc = x.reshape(M, C).astype(cdt)
    wc = w.astype(cdt)
    b2 = b.astype(jnp.float32).reshape(1, Cout)     # bias-add + ReLU stay f32

    cdt_size = cdt.itemsize
    out_size = jnp.dtype(out_dtype).itemsize

    capacity = _vmem_capacity_bytes()
    vmem_target = int(capacity * 0.70)
    vmem_cap = int(capacity * 0.875)

    weight_bytes = C * Cout * cdt_size
    use_cout_tiling = force_cout_tiling or weight_bytes > vmem_target // 3

    cost = pl.CostEstimate(
        flops=2 * M * C * Cout,
        transcendentals=0,
        bytes_accessed=M * C * cdt_size + weight_bytes + Cout * 4 + M * Cout * out_size,
    )

    if not use_cout_tiling:
        # ---------- resident-weight path (typical DETR embed dims) ----------
        tm, vmem_limit = _plan_resident(M, C, Cout, cdt_size, out_size,
                                        vmem_target, vmem_cap)
        grid = (pl.cdiv(M, tm),)
        in_specs = [
            pl.BlockSpec((tm, C), lambda i: (i, 0)),
            pl.BlockSpec((C, Cout), lambda i: (0, 0), pipeline_mode=pl.Buffered(1)),
            pl.BlockSpec((1, Cout), lambda i: (0, 0), pipeline_mode=pl.Buffered(1)),
        ]
        compiler_params = pltpu.CompilerParams(
            dimension_semantics=("parallel",), vmem_limit_bytes=vmem_limit)

        if expand == 1:
            out = pl.pallas_call(
                _linear_relu_kernel,
                out_shape=jax.ShapeDtypeStruct((M, Cout), out_dtype),
                grid_spec=pltpu.PrefetchScalarGridSpec(
                    num_scalar_prefetch=0, grid=grid, in_specs=in_specs,
                    out_specs=pl.BlockSpec((tm, Cout), lambda i: (i, 0))),
                compiler_params=compiler_params,
                cost_estimate=cost,
            )(xc, wc, b2)
            return out.reshape(N, B, Cout)

        out1, out2 = pl.pallas_call(
            _linear_relu_split_kernel,
            out_shape=(jax.ShapeDtypeStruct((M, C), out_dtype),
                       jax.ShapeDtypeStruct((M, C), out_dtype)),
            grid_spec=pltpu.PrefetchScalarGridSpec(
                num_scalar_prefetch=0, grid=grid, in_specs=in_specs,
                out_specs=[pl.BlockSpec((tm, C), lambda i: (i, 0)),
                           pl.BlockSpec((tm, C), lambda i: (i, 0))]),
            compiler_params=compiler_params,
            cost_estimate=cost,
        )(xc, wc, b2)
        return out1.reshape(N, B, C), out2.reshape(N, B, C)

    # ---------- Cout-tiled path (large embed_dim: weight streamed) ----------
    tm, tn, vmem_limit = _plan_cout_tiled(M, C, Cout, cdt_size, out_size,
                                          vmem_target, vmem_cap)
    grid = (pl.cdiv(M, tm), pl.cdiv(Cout, tn))
    in_specs = [
        pl.BlockSpec((tm, C), lambda i, j: (i, 0)),   # constant over j -> no re-DMA
        pl.BlockSpec((C, tn), lambda i, j: (0, j)),
        pl.BlockSpec((1, tn), lambda i, j: (0, j)),
    ]
    out = pl.pallas_call(
        _linear_relu_kernel,
        out_shape=jax.ShapeDtypeStruct((M, Cout), out_dtype),
        grid_spec=pltpu.PrefetchScalarGridSpec(
            num_scalar_prefetch=0, grid=grid, in_specs=in_specs,
            out_specs=pl.BlockSpec((tm, tn), lambda i, j: (i, j))),
        compiler_params=pltpu.CompilerParams(
            dimension_semantics=("parallel", "parallel"),
            vmem_limit_bytes=vmem_limit),
        cost_estimate=cost,
    )(xc, wc, b2)
    out = out.reshape(N, B, Cout)
    if expand == 1:
        return out
    return out[..., :C], out[..., C:]


# ---------------------------------------------------------------------------
# Self-test
# ---------------------------------------------------------------------------

if __name__ == "__main__":
    # Small shapes consistent with the module's (N, B, C) convention.
    N, B, C = 8, 2, 32
    expand = 2

    key = jax.random.PRNGKey(0)
    kx, kw, kb = jax.random.split(key, 3)

    x = jax.random.normal(kx, (N, B, C), dtype=jnp.float32)
    # nn.Linear(embed_dim, embed_dim*expand): torch weight is (Cout, C); we keep (C, Cout).
    w = jax.random.normal(kw, (C, C * expand), dtype=jnp.float32) * (1.0 / jnp.sqrt(C))
    b = jax.random.normal(kb, (C * expand,), dtype=jnp.float32) * 0.01

    def ref_fn(x_, w_, b_, bf16):
        if bf16:
            x_ = x_.astype(jnp.bfloat16).astype(jnp.float32)
            w_ = w_.astype(jnp.bfloat16).astype(jnp.float32)
        return jnp.maximum(jnp.einsum("nbc,cd->nbd", x_, w_) + b_, 0.0)

    # 1) expand==2, bf16 compute, fused split (resident-weight path).
    out1, out2 = jax.block_until_ready(token_split_forward(x, w, b, expand=2))
    zr = ref_fn(x, w, b, True)
    assert out1.shape == (N, B, C) and out2.shape == (N, B, C)
    assert jnp.allclose(out1, zr[..., :C], atol=1e-2, rtol=1e-2)
    assert jnp.allclose(out2, zr[..., C:], atol=1e-2, rtol=1e-2)

    # 2) expand==1, f32 compute path (tight tolerance, no casts).
    w1, b1 = w[:, :C], b[:C]
    o = jax.block_until_ready(
        token_split_forward(x, w1, b1, expand=1, compute_dtype=jnp.float32))
    assert o.shape == (N, B, C)
    assert jnp.allclose(o, ref_fn(x, w1, b1, False), atol=1e-5, rtol=1e-5)

    # 3) Ragged M (not a multiple of the row tile) -> masked, balanced 2-block grid.
    Nr, Br = 10, 3  # M = 30
    xr = jax.random.normal(kx, (Nr, Br, C), dtype=jnp.float32)
    r1, r2 = jax.block_until_ready(token_split_forward(xr, w, b, expand=2))
    zr2 = ref_fn(xr, w, b, True)
    assert jnp.allclose(r1, zr2[..., :C], atol=1e-2, rtol=1e-2)
    assert jnp.allclose(r2, zr2[..., C:], atol=1e-2, rtol=1e-2)

    # 4) Cout-tiled (streamed-weight) path, forced at small shapes for coverage.
    f1, f2 = jax.block_until_ready(
        token_split_forward(x, w, b, expand=2, force_cout_tiling=True))
    assert jnp.allclose(f1, zr[..., :C], atol=1e-2, rtol=1e-2)
    assert jnp.allclose(f2, zr[..., C:], atol=1e-2, rtol=1e-2)

    print("KERNEL_OK")
</pallas_src>

<mosaic_0001>
module attributes {stable_mosaic.version = 11 : i64} {
  func.func @_linear_relu_split_kernel(%arg0: i32, %arg1: memref<16x32xbf16, #tpu.memory_space<vmem>>, %arg2: memref<32x64xbf16, #tpu.memory_space<vmem>>, %arg3: memref<1x64xf32, #tpu.memory_space<vmem>>, %arg4: memref<16x32xf32, #tpu.memory_space<vmem>>, %arg5: memref<16x32xf32, #tpu.memory_space<vmem>>) attributes {dimension_semantics = [#tpu.dimension_semantics<parallel>], iteration_bounds = array<i64: 1>, scalar_prefetch = 0 : i64, scratch_operands = 0 : i64, tpu.core_type = #tpu.core_type<tc>, window_params = [{transform_indices = @transform_0, window_bounds = array<i64: 16, 32>}, {pipeline_mode = #tpu.pipeline_mode<synchronous>, transform_indices = @transform_1, window_bounds = array<i64: 32, 64>}, {pipeline_mode = #tpu.pipeline_mode<synchronous>, transform_indices = @transform_2, window_bounds = array<i64: 1, 64>}, {transform_indices = @transform_3, window_bounds = array<i64: 16, 32>}, {transform_indices = @transform_4, window_bounds = array<i64: 16, 32>}]} {
    %c0 = arith.constant 0 : index
    %c0_0 = arith.constant 0 : index
    %0 = vector.load %arg1[%c0, %c0_0] : memref<16x32xbf16, #tpu.memory_space<vmem>>, vector<16x32xbf16>
    %c0_1 = arith.constant 0 : index
    %c0_2 = arith.constant 0 : index
    %1 = vector.load %arg2[%c0_1, %c0_2] : memref<32x64xbf16, #tpu.memory_space<vmem>>, vector<32x64xbf16>
    %cst = arith.constant dense<0.000000e+00> : vector<16x64xf32>
    %2 = tpu.matmul %0, %1, %cst {dimension_numbers = #tpu.dot_dimension_numbers<[1], [0], [0], [1], [0, 0, 1, 1], [], []>} : vector<16x32xbf16>, vector<32x64xbf16>, vector<16x64xf32> -> vector<16x64xf32>
    %c0_3 = arith.constant 0 : index
    %c0_4 = arith.constant 0 : index
    %3 = vector.load %arg3[%c0_3, %c0_4] : memref<1x64xf32, #tpu.memory_space<vmem>>, vector<1x64xf32>
    %4 = vector.broadcast %3 : vector<1x64xf32> to vector<16x64xf32>
    %5 = arith.addf %2, %4 : vector<16x64xf32>
    %cst_5 = arith.constant 0.000000e+00 : f32
    %6 = vector.broadcast %cst_5 : f32 to vector<16x64xf32>
    %7 = arith.maximumf %5, %6 : vector<16x64xf32>
    %8 = vector.extract_strided_slice %7 {offsets = [0, 0], sizes = [16, 32], strides = [1, 1]} : vector<16x64xf32> to vector<16x32xf32>
    %c0_6 = arith.constant 0 : index
    %c0_7 = arith.constant 0 : index
    %9 = vector.load %arg4[%c0_6, %c0_7] : memref<16x32xf32, #tpu.memory_space<vmem>>, vector<16x32xf32>
    tpu.vector_store %arg4[%c0_6, %c0_7], %8 {strides = array<i32>} : memref<16x32xf32, #tpu.memory_space<vmem>>, vector<16x32xf32>,
    %10 = vector.extract_strided_slice %7 {offsets = [0, 32], sizes = [16, 32], strides = [1, 1]} : vector<16x64xf32> to vector<16x32xf32>
    %c0_8 = arith.constant 0 : index
    %c0_9 = arith.constant 0 : index
    %11 = vector.load %arg5[%c0_8, %c0_9] : memref<16x32xf32, #tpu.memory_space<vmem>>, vector<16x32xf32>
    tpu.vector_store %arg5[%c0_8, %c0_9], %10 {strides = array<i32>} : memref<16x32xf32, #tpu.memory_space<vmem>>, vector<16x32xf32>,
    return
  }
  func.func @transform_0(%arg0: i32) -> (i32, i32) {
    %c0_i32 = arith.constant 0 : i32
    %c0_i32_0 = arith.constant 0 : i32
    return %arg0, %c0_i32 : i32, i32
  }
  func.func @transform_1(%arg0: i32) -> (i32, i32) {
    %c0_i32 = arith.constant 0 : i32
    %c0_i32_0 = arith.constant 0 : i32
    %c0_i32_1 = arith.constant 0 : i32
    return %c0_i32, %c0_i32_0 : i32, i32
  }
  func.func @transform_2(%arg0: i32) -> (i32, i32) {
    %c0_i32 = arith.constant 0 : i32
    %c0_i32_0 = arith.constant 0 : i32
    %c0_i32_1 = arith.constant 0 : i32
    return %c0_i32, %c0_i32_0 : i32, i32
  }
  func.func @transform_3(%arg0: i32) -> (i32, i32) {
    %c0_i32 = arith.constant 0 : i32
    %c0_i32_0 = arith.constant 0 : i32
    return %arg0, %c0_i32 : i32, i32
  }
  func.func @transform_4(%arg0: i32) -> (i32, i32) {
    %c0_i32 = arith.constant 0 : i32
    %c0_i32_0 = arith.constant 0 : i32
    return %arg0, %c0_i32 : i32, i32
  }
}

</mosaic_0001>

<bundles_post_ra>
// kernel: token_split_forward.1
= control target key start
LH: loop header
LB: loop body
LE: loop exit
PB: predicated region body
PF: predicated region fallthrough
CT: control target
= control target key end

     0   :  { %10 = vsyncpa [#allocation3], 0  ;;  %v214_v1 = vmov 0.0   ;;  %vm215_vm0 = vmmov 0   ;;  %s287_s0 = inlined_call_operand.vmem [shape: bf16[16,32], index: 0, kind: input, shape index: {}]   ;;  %s288_s1 = inlined_call_operand.vmem [shape: bf16[32,64], index: 1, kind: input, shape index: {}]   ;;  %s289_s2 = inlined_call_operand.vmem [shape: f32[1,64], index: 2, kind: input, shape index: {}]   ;;  %s290_s3 = inlined_call_operand.hbm [shape: f32[16,32], index: 3, kind: output, shape index: {0}]   ;;  %s291_s4 = inlined_call_operand.hbm [shape: f32[16,32], index: 4, kind: output, shape index: {1}]  }
   0x1   :  { %v163_v0 = vld [vmem:[%s288_s1] sm:$0xff]   ;;  %148 = vmatprep.subr.bf16.mxu0 %v214_v1  ;;  %v164_v2 = vld [vmem:[%s288_s1 + $0x8] sm:$0xff]   ;;  %152 = vmatprep.mubr.msk.bf16.mxu0 %vm215_vm0, %v214_v1 }
   0x2   :  { %149 = vmatpush3.bf16.msra.mxu0 %v163_v0 }
   0x3   :  { %150 = vmatprep.subr.bf16.mxu0 %v214_v1 }
   0x4   :  { %11 = vsyncpa [#allocation5], 0  ;;  %v165_v3 = vld [vmem:[%s287_s0] sm:$0xff]   ;;  %vm49_vm1 = vcmask 261120   ;;  %s216_s1 = smov [#allocation2]   ;;  %s217_s0 = smov 96  }
   0x5   :  { %v140_v4 = vld [vmem:[%s289_s2] ss:$0 sm:$0xff]  ;;  %s113_s23 = sshll.u32 %s216_s1, 4  ;;  %s114_s23 = int_to_ptr.vmem [resolvable:$true] %s113_s23 }
   0x6   :  { %151 = vmatpush3.bf16.msra.mxu0 %v164_v2  ;;  %s166_s24 = scalar_lea.vmem %s114_s23, 256  ;;  %p171_p1 = scmp.lt.s32.totalorder %s114_s23, %s114_s23 }
   0x7   :  { %p167_p0 = scmp.ne.s32.totalorder %s114_s23, %s166_s24  ;;  %p172_p2 = scmp.lt.s32.totalorder %s166_s24, %s166_s24 }
   0x9   :  { %153 = vmatmul.mubr.msk.bf16.vlgmr.msra.gmra.mrb[0].mxu0 %vm49_vm1, %v165_v3  ;;  %p173_p3 = por %p172_p2, %p171_p1 }
   0xb   :  { %p174_p4 = pnand %p173_p3, %p167_p0 }
  0xdc   :  { %v87_v5 = vpop.f32.mrb[0].mxu0 }
  0xdd   :  { %v88_v6 = vadd.f32 %v140_v4, %v87_v5  ;;  %v154_v7 = vpop.f32.mrb[1].mxu0 }
  0xde   :  { %v90_v8 = vpop.f32.mrb[2].mxu0 }
  0xdf   :  { %v94_v9 = vmax.f32 %v88_v6, 0.0  ;;  %v91_v10 = vadd.f32 %v140_v4, %v90_v8  ;;  %v155_v11 = vpop.f32.mrb[3].mxu0 }
  0xe1   :  { %96 = vst.msk [vmem:[#allocation2] sm:$0xff] %vm49_vm1, %v94_v9  ;;  %v95_v12 = vmax.f32 %v91_v10, 0.0  ;;  %100 = vrot.lane.b32.xlu0 %v94_v9, %s217_s0 }
  0xe3   :  { %97 = vst.msk [vmem:[#allocation2 + $0x8] sm:$0xff] %vm49_vm1, %v95_v12 }
  0xe4   :  { %177 = shalt.err (!%p174_p4)
}
  0xe5   :  { %s178_s26 = scalar_lea.hbm %s290_s3, 256 }
  0xe6   :  { %p179_p5 = scmp.ne.s32.totalorder %s290_s3, %s178_s26  ;;  %p182_p6 = scmp.lt.u32.totalorder %s178_s26, %s290_s3 }
  0xe8   :  { %p184_p7 = pnand %p182_p6, %p179_p5 }
  0xea   :  { %187 = shalt.err (!%p184_p7)
}
  0xeb   :  { %s218_s5 = smov 128   ;;  %s219_s6 = smov 8   ;;  %102 = vrot.lane.b32.xlu0 %v95_v12, %s217_s0 }
  0xec   :  { %119 = dma.vmem_to_hbm [thread:$0]  %s114_s23, 256, %s290_s3, [#allocation3], %s218_s5, %s218_s5, %s219_s6  }
  0xed   :  { %s220_s9 = smov [#allocation4]  }
  0xee   :  { %s125_s10 = sshll.u32 %s220_s9, 4  ;;  %s126_s10 = int_to_ptr.vmem [resolvable:$true] %s125_s10 }
  0xef   :  { %s188_s11 = scalar_lea.vmem %s126_s10, 256  ;;  %p193_p9 = scmp.lt.s32.totalorder %s126_s10, %s126_s10 }
  0xf0   :  { %p189_p8 = scmp.ne.s32.totalorder %s126_s10, %s188_s11  ;;  %p194_p10 = scmp.lt.s32.totalorder %s188_s11, %s188_s11 }
  0xf2   :  { %p195_p11 = por %p194_p10, %p193_p9 }
  0xf4   :  { %p196_p12 = pnand %p195_p11, %p189_p8 }
 0x153   :  { %v101_v13 = vpop.permute.xlu0 %100 }
 0x154   :  { %106 = vst.msk [vmem:[#allocation4] sm:$0xff] %vm49_vm1, %v101_v13 }
 0x15d   :  { %v103_v14 = vpop.permute.xlu0 %102 }
 0x15e   :  { %107 = vst.msk [vmem:[#allocation4 + $0x8] sm:$0xff] %vm49_vm1, %v103_v14 }
 0x15f   :  { %199 = shalt.err (!%p196_p12)
}
 0x160   :  { %s200_s3 = scalar_lea.hbm %s291_s4, 256 }
 0x161   :  { %p201_p13 = scmp.ne.s32.totalorder %s291_s4, %s200_s3  ;;  %p204_p0 = scmp.lt.u32.totalorder %s200_s3, %s291_s4 }
 0x163   :  { %p206_p1 = pnand %p204_p0, %p201_p13 }
 0x165   :  { %209 = shalt.err (!%p206_p1)
}
 0x166   :  { %131 = dma.vmem_to_hbm [thread:$0]  %s126_s10, 256, %s291_s4, [#allocation5], %s218_s5, %s218_s5, %s219_s6  }
 0x167   :  { %210 = dma.done.wait [#allocation3], 256  }
 0x168   :  { %211 = vsyncadd [#allocation3], 4294967040 }
 0x169   :  { %212 = dma.done.wait [#allocation5], 256  }
 0x16a   :  { %213 = vsyncadd [#allocation5], 4294967040 }
 0x16b   :  { %138 = vsyncpa [#allocation3], 1 }
 0x16c   :  { %139 = vsyncpa [#allocation5], 1 }

</bundles_post_ra>
